<compile_context>
chip_gen: v5e
topology: v5e:2x2
jax: 0.10.0
libtpu: 0.0.40
codegen_flags: <defaults>
</compile_context>

<pallas_src>
import functools

import jax
import jax.numpy as jnp
from jax.experimental import pallas as pl
from jax.experimental.pallas import tpu as pltpu


def _round_up(n, m):
    return ((n + m - 1) // m) * m


def _sublane_multiple(dtype):
    # minimum second-minor tile: 8 for 4-byte, 16 for 2-byte, 32 for 1-byte
    itemsize = jnp.dtype(dtype).itemsize
    return max(8, 32 // itemsize)


def head_kernel(x_ref, w_ref, b_ref, o_ref):
    # x_ref: (TB, D) VMEM tile (f32 or bf16)
    # w_ref: (1, D)  VMEM, resident across all grid steps
    # b_ref: (1, 1)  SMEM scalar bias
    # o_ref: (1, 1, TB) VMEM lane-dense output tile
    x = x_ref[...]
    d = w_ref.shape[1]
    # Broadcast the weight row to 8 sublanes (cheap) so the MXU lhs is a full
    # sublane tile; all 8 rows are identical and only row 0 is used.
    w = jnp.broadcast_to(w_ref[...], (8, d)).astype(x.dtype)
    # NT contraction on the MXU (same dimension numbers flash-attn uses for
    # q @ k^T): (8, D) x (TB, D) -> (8, TB), f32 accumulation.
    logits = jax.lax.dot_general(
        w, x,
        dimension_numbers=(((1,), (1,)), ((), ())),
        preferred_element_type=jnp.float32,
        precision=jax.lax.Precision.HIGHEST,
    )[0:1, :]                                   # (1, TB), lane-dense
    logits = logits + b_ref[0, 0]
    o_ref[...] = jax.nn.sigmoid(logits)[None].astype(o_ref.dtype)   # (1,1,TB)


@functools.partial(jax.jit, static_argnames=("tb",))
def head_forward(x, w_row, b, *, tb=8192):
    """x: [B, 128] f32/bf16, w_row: [1, 128] f32, b: [1, 1] f32 -> [B, 1] f32."""
    B, D = x.shape
    sub = _sublane_multiple(x.dtype)
    TB = min(tb, _round_up(B, sub))
    num_tiles = pl.cdiv(B, TB)          # ragged last block handled by Pallas

    out = pl.pallas_call(
        head_kernel,
        out_shape=jax.ShapeDtypeStruct((num_tiles, 1, TB), jnp.float32),
        grid=(num_tiles,),
        in_specs=[
            pl.BlockSpec((TB, D), lambda i: (i, 0)),   # x: pipelined batch tiles
            pl.BlockSpec((1, D), lambda i: (0, 0)),    # weight row: resident
            pl.BlockSpec(memory_space=pltpu.SMEM),     # scalar bias
        ],
        out_specs=pl.BlockSpec((1, 1, TB), lambda i: (i, 0, 0)),  # lane-dense
        compiler_params=pltpu.CompilerParams(
            dimension_semantics=("parallel",),         # megacore sharding on v7x
            vmem_limit_bytes=32 * 1024 * 1024,
        ),
        cost_estimate=pl.CostEstimate(
            flops=2 * B * D,
            transcendentals=B,
            bytes_accessed=B * D * x.dtype.itemsize + B * 4 + D * 4,
        ),
    )(x, w_row, b)

    # Flatten lane-dense tiles back to a (B, 1) column; tail rows (garbage
    # from the ragged last block) are dropped here.
    return out.reshape(num_tiles * TB, 1)[:B]


if __name__ == "__main__":
    key = jax.random.PRNGKey(0)
    kx, kw, kb = jax.random.split(key, 3)

    B, D = 8, 128
    x = jax.random.normal(kx, (B, D), dtype=jnp.float32)

    # PyTorch-style Linear init: uniform(-1/sqrt(D), 1/sqrt(D))
    bound = 1.0 / jnp.sqrt(jnp.float32(D))
    w = jax.random.uniform(kw, (1, D), dtype=jnp.float32, minval=-bound, maxval=bound)
    b = jax.random.uniform(kb, (1,), dtype=jnp.float32, minval=-bound, maxval=bound)

    out = head_forward(x, w, b.reshape(1, 1))
    out = jax.block_until_ready(out)

    # Reference check in plain JAX
    ref = jax.nn.sigmoid(x @ w.T + b)
    assert out.shape == (B, 1)
    assert jnp.allclose(out, ref, atol=2e-3), float(jnp.max(jnp.abs(out - ref)))

    print("KERNEL_OK")
</pallas_src>

<mosaic_0001>
module attributes {stable_mosaic.version = 11 : i64} {
  func.func @head_kernel(%arg0: i32, %arg1: memref<8x128xf32, #tpu.memory_space<vmem>>, %arg2: memref<1x128xf32, #tpu.memory_space<vmem>>, %arg3: memref<1x1xf32, #tpu.memory_space<smem>>, %arg4: memref<1x1x8xf32, #tpu.memory_space<vmem>>) attributes {dimension_semantics = [#tpu.dimension_semantics<parallel>], iteration_bounds = array<i64: 1>, scalar_prefetch = 0 : i64, scratch_operands = 0 : i64, tpu.core_type = #tpu.core_type<tc>, window_params = [{transform_indices = @transform_0, window_bounds = array<i64: 8, 128>}, {pipeline_mode = #tpu.pipeline_mode<synchronous>, transform_indices = @transform_1, window_bounds = array<i64: 1, 128>}, {transform_indices = @transform_2, window_bounds = array<i64: 1, 1>}, {transform_indices = @transform_3, window_bounds = array<i64: 1, 1, 8>}]} {
    %c0 = arith.constant 0 : index
    %c0_0 = arith.constant 0 : index
    %0 = vector.load %arg1[%c0, %c0_0] : memref<8x128xf32, #tpu.memory_space<vmem>>, vector<8x128xf32>
    %c0_1 = arith.constant 0 : index
    %c0_2 = arith.constant 0 : index
    %1 = vector.load %arg2[%c0_1, %c0_2] : memref<1x128xf32, #tpu.memory_space<vmem>>, vector<1x128xf32>
    %2 = vector.shape_cast %1 : vector<1x128xf32> to vector<1x128xf32>
    %3 = vector.broadcast %2 : vector<1x128xf32> to vector<8x128xf32>
    %cst = arith.constant dense<0.000000e+00> : vector<8x8xf32>
    %4 = tpu.matmul %3, %0, %cst {dimension_numbers = #tpu.dot_dimension_numbers<[1], [1], [0], [0], [0, 0, 1, 0], [], []>, precision = #tpu.contract_precision<fp32>} : vector<8x128xf32>, vector<8x128xf32>, vector<8x8xf32> -> vector<8x8xf32>
    %5 = vector.extract_strided_slice %4 {offsets = [0, 0], sizes = [1, 8], strides = [1, 1]} : vector<8x8xf32> to vector<1x8xf32>
    %c0_3 = arith.constant 0 : index
    %c0_4 = arith.constant 0 : index
    %6 = memref.load %arg3[%c0_3, %c0_4] : memref<1x1xf32, #tpu.memory_space<smem>>
    %7 = vector.broadcast %6 : f32 to vector<1x8xf32>
    %8 = arith.addf %5, %7 : vector<1x8xf32>
    %9 = arith.negf %8 : vector<1x8xf32>
    %10 = math.exp %9 : vector<1x8xf32>
    %cst_5 = arith.constant 1.000000e+00 : f32
    %11 = vector.broadcast %cst_5 : f32 to vector<1x8xf32>
    %12 = arith.addf %11, %10 : vector<1x8xf32>
    %13 = arith.divf %11, %12 : vector<1x8xf32>
    %14 = vector.shape_cast %13 : vector<1x8xf32> to vector<1x1x8xf32>
    %c0_6 = arith.constant 0 : index
    %c0_7 = arith.constant 0 : index
    %c0_8 = arith.constant 0 : index
    %15 = vector.load %arg4[%c0_6, %c0_7, %c0_8] : memref<1x1x8xf32, #tpu.memory_space<vmem>>, vector<1x1x8xf32>
    tpu.vector_store %arg4[%c0_6, %c0_7, %c0_8], %14 {strides = array<i32>} : memref<1x1x8xf32, #tpu.memory_space<vmem>>, vector<1x1x8xf32>,
    return
  }
  func.func @transform_0(%arg0: i32) -> (i32, i32) {
    %c0_i32 = arith.constant 0 : i32
    %c0_i32_0 = arith.constant 0 : i32
    return %arg0, %c0_i32 : i32, i32
  }
  func.func @transform_1(%arg0: i32) -> (i32, i32) {
    %c0_i32 = arith.constant 0 : i32
    %c0_i32_0 = arith.constant 0 : i32
    %c0_i32_1 = arith.constant 0 : i32
    return %c0_i32, %c0_i32_0 : i32, i32
  }
  func.func @transform_2(%arg0: i32) -> (i32, i32) {
    %c0_i32 = arith.constant 0 : i32
    %c0_i32_0 = arith.constant 0 : i32
    %c0_i32_1 = arith.constant 0 : i32
    return %c0_i32, %c0_i32_0 : i32, i32
  }
  func.func @transform_3(%arg0: i32) -> (i32, i32, i32) {
    %c0_i32 = arith.constant 0 : i32
    %c0_i32_0 = arith.constant 0 : i32
    %c0_i32_1 = arith.constant 0 : i32
    return %arg0, %c0_i32, %c0_i32_0 : i32, i32, i32
  }
}

</mosaic_0001>

<bundles_post_ra>
// kernel: head_forward.1
= control target key start
LH: loop header
LB: loop body
LE: loop exit
PB: predicated region body
PF: predicated region fallthrough
CT: control target
= control target key end

     0   :  { %9 = vsyncpa [#allocation4], 0  ;;  %s316_s0 = inlined_call_operand.hbm [shape: f32[8,128], index: 0, kind: input, shape index: {}]   ;;  %s317_s1 = inlined_call_operand.vmem [shape: f32[1,128], index: 1, kind: input, shape index: {}]   ;;  %s318_s2 = inlined_call_operand.<no memory space> [shape: f32[1,1], index: 2, kind: input, shape index: {}]   ;;  %s319_s3 = inlined_call_operand.hbm [shape: f32[1,1,8], index: 3, kind: output, shape index: {}]  }
   0x1   :  { %10 = vsyncpa [#allocation5], 0  ;;  %s16_s14 = sshll.u32 %s316_s0, 4  ;;  %s282_s15 = smov [#allocation3]   ;;  %s17_s14 = int_to_ptr.hbm [resolvable:$true] %s16_s14 }
   0x2   :  { %s18_s16 = sshll.u32 %s282_s15, 4  ;;  %s19_s16 = int_to_ptr.vmem [resolvable:$true] %s18_s16 }
   0x3   :  { %21 = dma.hbm_to_vmem [thread:$0]  %s17_s14, 128, %s19_s16, [#allocation4]  }
   0x4   :  { %278 = dma.done.wait [#allocation4], 128  }
   0x5   :  { %279 = vsyncadd [#allocation4], 4294967168  ;;  %v30_v0 = vld [vmem:[#allocation3] sm:$0xff]  ;;  %v182_v22 = vstv %s318_s2  ;;  %s283_s19 = smov [#allocation6]   ;;  %s212_s2 = sshll.u32 %s319_s3, 4  ;;  %vm203_vm3 = vcmask 57344   ;;  %s213_s2 = int_to_ptr.hbm [resolvable:$true] %s212_s2 }
   0x6   :  { %v225_v1 = vld [vmem:[%s317_s1] ss:$0 sm:$0xff]  ;;  %v50_v2 = vand.u32 4294901760, %v30_v0  ;;  %s210_s20 = sshll.u32 %s283_s19, 4  ;;  %s211_s20 = int_to_ptr.vmem [resolvable:$true] %s210_s20 }
   0x7   :  { %v52_v3 = vand.u32 4294901760, %v225_v1 }
   0x8   :  { %v77_v4 = vsub.f32 %v30_v0, %v50_v2  ;;  %127 = vmatpush.xpose.msra.mxu3 %v50_v2  ;;  %51 = vmatpush.xpose.msra.mxu0 %v50_v2 }
   0x9   :  { %v53_v5 = vsub.f32 %v225_v1, %v52_v3 }
   0xa   :  { %104 = vmatpush.xpose.msra.mxu2 %v77_v4  ;;  %v78_v6 = vand.u32 4294901760, %v77_v4 }
   0xb   :  { %v54_v7 = vand.u32 4294901760, %v53_v5 }
   0xc   :  { %v79_v8 = vsub.f32 %v77_v4, %v78_v6  ;;  %153 = vmatpush.xpose.msrb.mxu0 %v78_v6 }
   0xd   :  { %107 = vmatmul.f32.vlgmr.msra.gmra.mxu2 %v53_v5  ;;  %131 = vmatmul.f32.vlgmr.msra.gmra.mxu3 %v54_v7  ;;  %v55_v9 = vsub.f32 %v53_v5, %v54_v7 }
   0xe   :  { %v80_v10 = vand.u32 4294901760, %v79_v8 }
   0xf   :  { %v56_v11 = vand.u32 4294901760, %v55_v9 }
  0x10   :  { %81 = vmatpush.xpose.msra.mxu1 %v80_v10 }
  0x11   :  { %57 = vmatmul.f32.vlgmr.msra.gmra.mxu0 %v56_v11 }
  0x13   :  { %83 = vmatmul.f32.vlgmr.msra.gmra.mxu1 %v52_v3 }
  0x14   :  { %175 = vmatpush.xpose.msrb.mxu1 %v50_v2 }
  0x19   :  { %155 = vmatmul.f32.vlgmr.msrb.gmra.mxu0 %v52_v3 }
  0x1b   :  { %177 = vmatmul.f32.vlgmr.msrb.gmra.mxu1 %v52_v3 }
  0x8e   :  { %v58_v12 = vpop.f32.mrf.mxu0 }
  0x90   :  { %v84_v13 = vpop.f32.mrf.mxu1  ;;  %v108_v14 = vpop.f32.mrf.mxu2 }
  0x91   :  { %v85_v15 = vadd.f32 %v84_v13, %v58_v12  ;;  %v132_v16 = vpop.f32.mrf.mxu3 }
  0x93   :  { %v109_v17 = vadd.f32 %v108_v14, %v85_v15 }
  0x95   :  { %v133_v18 = vadd.f32 %v132_v16, %v109_v17 }
  0x96   :  { %v156_v19 = vpop.f32.mrf.mxu0 }
  0x97   :  { %v157_v20 = vadd.f32 %v156_v19, %v133_v18 }
  0x98   :  { %v178_v21 = vpop.f32.mrf.mxu1 }
  0x99   :  { %v179_v23 = vadd.f32 %v178_v21, %v157_v20 }
  0x9b   :  { %v183_v24 = vadd.f32 %v182_v22, %v179_v23 }
  0x9d   :  { %v222_v25 = vmul.f32 -1.442695, %v183_v24 }
  0x9f   :  { %226 = vpow2.f32 %v222_v25 }
  0xa5   :  { %v227_v26 = vpop.eup %226 }
  0xa6   :  { %v187_v27 = vadd.f32 1.0, %v227_v26 }
  0xa8   :  { %228 = vrcp.f32 %v187_v27  ;;  %v199_v31 = vand.u32 2147483648, %v187_v27  ;;  %v197_v33 = vand.u32 2147483647, %v187_v27  ;;  %vm193_vm1 = vweird.f32 %v187_v27 }
  0xaa   :  { %v200_v35 = vor.u32 1.1754944e-38, %v199_v31  ;;  %vm198_vm4 = vcmp.eq.f32.partialorder %v197_v33, 8.507059e+37 }
  0xae   :  { %v229_v28 = vpop.eup %228 }
  0xaf   :  { %v189_v29 = vmul.f32 %v229_v28, %v187_v27  ;;  %vm194_vm0 = vweird.f32 %v229_v28 }
  0xb0   :  { %vm195_vm2 = vmor %vm193_vm1, %vm194_vm0 }
  0xb1   :  { %v190_v30 = vsub.f32 1.0, %v189_v29 }
  0xb3   :  { %v191_v32 = vmul.f32 %v229_v28, %v190_v30 }
  0xb5   :  { %v192_v34 = vadd.f32 %v229_v28, %v191_v32 }
  0xb7   :  { %v196_v36 = vsel %vm195_vm2, %v229_v28, %v192_v34 }
  0xb8   :  { %v201_v37 = vsel %vm198_vm4, %v200_v35, %v196_v36 }
  0xb9   :  { %204 = vst.msk [vmem:[#allocation6] sm:$0x1] %vm203_vm3, %v201_v37 }
  0xba   :  { %215 = dma.vmem_to_hbm [thread:$0]  %s211_s20, 16, %s213_s2, [#allocation5]  }
  0xbb   :  { %280 = dma.done.wait [#allocation5], 16  }
  0xbc   :  { %281 = vsyncadd [#allocation5], 4294967280 }
  0xbd   :  { %220 = vsyncpa [#allocation4], 1 }
  0xbe   :  { %221 = vsyncpa [#allocation5], 1 }

</bundles_post_ra>
